<compile_context>
chip_gen: v7x
topology: tpu7x:2x2x1
jax: 0.10.0
libtpu: 0.0.40
codegen_flags: <defaults>
</compile_context>

<pallas_src>
import numpy as np
import jax
import jax.numpy as jnp
from jax import lax
from jax.experimental import pallas as pl
from jax.experimental.pallas import tpu as pltpu


def _round_up(a: int, b: int) -> int:
    return -(-a // b) * b


def _dsconv_kernel(x_ref, w_ref, b_ref, o_ref):
    # x_ref: (TH, Kp)  bf16  -- TH fused (N*Ho) output rows, Kp = pad128(3*Wp*C) lanes
    # w_ref: (Kp, Np)  bf16  -- fused depthwise (x) pointwise banded weight (zero padded)
    # b_ref: (1,  Np)  f32   -- fused bias tiled over Wo (zero in the lane padding)
    # o_ref: (TH, Np)        -- lane-dense output slab (full unmasked vst)
    acc = b_ref[...].astype(jnp.float32)                      # bias-initialised accumulator
    acc = acc + jnp.dot(x_ref[...], w_ref[...],
                        preferred_element_type=jnp.float32)   # one big MXU matmul
    o_ref[...] = acc.astype(o_ref.dtype)


def depthwise_separable_conv(x_nchw, dw_w, dw_b, pw_w, pw_b, *, stride,
                             compute_dtype=jnp.bfloat16):
    """x_nchw: (N, C, H, W). dw_w: (3,3,C). dw_b: (C,). pw_w: (C,Cout). pw_b: (Cout,)."""
    N, C, H, W = x_nchw.shape
    Cout = pw_w.shape[1]
    s = int(stride)
    Ho = (H - 1) // s + 1
    Wo = (W - 1) // s + 1
    Wp = W + 2
    K = 3 * Wp * C                      # contraction: (ky, win, c)
    Kp = _round_up(K, 128)              # lane/MXU-depth aligned contraction
    No = Wo * Cout
    Np = _round_up(No, 128)             # lane-dense output width
    M = N * Ho                          # batch folded into the matmul M dimension

    f32 = jnp.float32
    out_dtype = x_nchw.dtype
    cd_size = np.dtype(compute_dtype).itemsize
    out_size = np.dtype(out_dtype).itemsize

    # ---- fold depthwise (+bias) into the pointwise conv: one banded weight matrix ----
    fused = jnp.einsum("yxc,co->yxco", dw_w.astype(f32), pw_w.astype(f32))   # (3,3,C,Cout)
    sel = np.zeros((3, Wp, Wo), np.float32)          # sel[kx, win, xo] = 1 iff win == xo*s+kx
    for kx in range(3):
        for xo in range(Wo):
            sel[kx, xo * s + kx, xo] = 1.0
    wband = jnp.einsum("xpw,yxco->ypcwo", jnp.asarray(sel), fused)           # (3,Wp,C,Wo,Cout)
    wband = wband.reshape(K, No)
    wband = jnp.pad(wband, ((0, Kp - K), (0, Np - No))).astype(compute_dtype)
    fused_b = pw_b.astype(f32) + dw_b.astype(f32) @ pw_w.astype(f32)         # (Cout,)
    b_row = jnp.pad(jnp.tile(fused_b, Wo), (0, Np - No)).reshape(1, Np).astype(f32)

    # ---- ky-im2col: rows (n, yo) -> lanes (ky, win, c); contiguous, lane-dense ----
    x_nhwc = jnp.transpose(x_nchw, (0, 2, 3, 1))
    x_pad = jnp.pad(x_nhwc, ((0, 0), (1, 1), (1, 1), (0, 0)))                # (N, H+2, Wp, C)
    rows = jnp.stack([x_pad[:, ky:ky + (Ho - 1) * s + 1:s] for ky in range(3)], axis=2)
    xg = rows.reshape(M, K).astype(compute_dtype)                            # (N*Ho, 3*Wp*C)

    # ---- row tile: largest multiple-of-8 TH (<=256) fitting the per-chip VMEM budget ----
    try:
        vmem_cap = int(pltpu.get_tpu_info().vmem_capacity_bytes)
    except Exception:
        vmem_cap = 64 * 1024 * 1024                  # v7x-safe fallback
    budget = vmem_cap * 3 // 4                       # leave Mosaic scratch headroom

    def vmem_est(th):
        x_blk = th * Kp * cd_size
        w_blk = Kp * Np * cd_size
        b_blk = Np * 4
        o_blk = th * Np * out_size
        tmp = 2 * th * Np * 4                        # f32 accumulator temporaries
        return 2 * (x_blk + w_blk + b_blk + o_blk) + tmp   # double-buffered blocks

    TH = min(256, max(_round_up(M, 8), 8))
    while TH > 8 and vmem_est(TH) > budget:
        TH -= 8
    Mp = _round_up(M, TH)
    G = Mp // TH
    xg = jnp.pad(xg, ((0, Mp - M), (0, Kp - K)))     # padded rows/lanes are zero

    vmem_limit = int(min(max(4 * vmem_est(TH), 16 * 1024 * 1024), budget))
    vmem_limit = max(vmem_limit, vmem_est(TH))       # never below the actual need

    out = pl.pallas_call(
        _dsconv_kernel,
        out_shape=jax.ShapeDtypeStruct((Mp, Np), out_dtype),
        grid_spec=pltpu.PrefetchScalarGridSpec(
            num_scalar_prefetch=0,
            grid=(G,),
            in_specs=[
                pl.BlockSpec((TH, Kp), lambda r: (r, 0)),
                pl.BlockSpec((Kp, Np), lambda r: (0, 0)),   # constant block: fetched once
                pl.BlockSpec((1, Np), lambda r: (0, 0)),    # constant block: fetched once
            ],
            out_specs=pl.BlockSpec((TH, Np), lambda r: (r, 0)),
        ),
        compiler_params=pltpu.CompilerParams(
            dimension_semantics=("parallel",),
            vmem_limit_bytes=vmem_limit),
    )(xg, wband, b_row)

    # (Mp, Np) -> valid rows/cols -> NCHW to match the PyTorch output convention.
    out = out[:M, :No].reshape(N, Ho, Wo, Cout)
    return jnp.transpose(out, (0, 3, 1, 2))


def _reference(x_nchw, dw_w, dw_b, pw_w, pw_b, *, stride):
    """Pure-JAX reference (lax.conv), matching nn.Conv2d semantics."""
    N, C, H, W = x_nchw.shape
    Cout = pw_w.shape[1]
    x_nhwc = jnp.transpose(x_nchw, (0, 2, 3, 1))
    dw = lax.conv_general_dilated(
        x_nhwc, dw_w.reshape(3, 3, 1, C),
        window_strides=(stride, stride), padding=[(1, 1), (1, 1)],
        dimension_numbers=("NHWC", "HWIO", "NHWC"),
        feature_group_count=C) + dw_b
    pw = lax.conv_general_dilated(
        dw, pw_w.reshape(1, 1, C, Cout),
        window_strides=(1, 1), padding="VALID",
        dimension_numbers=("NHWC", "HWIO", "NHWC")) + pw_b
    return jnp.transpose(pw, (0, 3, 1, 2))


if __name__ == "__main__":
    # Small shapes consistent with the module's forward: NCHW input.
    N, C, H, W = 2, 4, 16, 16
    Cout = 8

    key = jax.random.PRNGKey(0)
    kx_, k1, k2, k3, k4 = jax.random.split(key, 5)

    x = jax.random.normal(kx_, (N, C, H, W), dtype=jnp.float32)
    # Deterministic synthetic parameters (nn.Conv2d params in kernel-friendly layouts:
    # depthwise (3,3,C), pointwise (C,Cout)).
    dw_w = jax.random.normal(k1, (3, 3, C), dtype=jnp.float32) * 0.2
    dw_b = jax.random.normal(k2, (C,), dtype=jnp.float32) * 0.1
    pw_w = jax.random.normal(k3, (C, Cout), dtype=jnp.float32) * 0.2
    pw_b = jax.random.normal(k4, (Cout,), dtype=jnp.float32) * 0.1

    for stride in (1, 2):
        out = depthwise_separable_conv(x, dw_w, dw_b, pw_w, pw_b, stride=stride)
        out = jax.block_until_ready(out)
        ref = _reference(x, dw_w, dw_b, pw_w, pw_b, stride=stride)
        Ho = (H - 1) // stride + 1
        Wo = (W - 1) // stride + 1
        assert out.shape == (N, Cout, Ho, Wo), (out.shape, stride)
        # bf16 operands with f32 accumulation -> bf16-level tolerance vs the f32 reference.
        assert jnp.allclose(out, ref, atol=3e-2, rtol=3e-2), f"mismatch (stride={stride})"

    print("KERNEL_OK")
</pallas_src>

<mosaic_0001>
module attributes {stable_mosaic.version = 11 : i64} {
  func.func @_dsconv_kernel(%arg0: i32, %arg1: memref<32x256xbf16, #tpu.memory_space<vmem>>, %arg2: memref<256x128xbf16, #tpu.memory_space<vmem>>, %arg3: memref<1x128xf32, #tpu.memory_space<vmem>>, %arg4: memref<32x128xf32, #tpu.memory_space<vmem>>) attributes {dimension_semantics = [#tpu.dimension_semantics<parallel>], iteration_bounds = array<i64: 1>, scalar_prefetch = 0 : i64, scratch_operands = 0 : i64, tpu.core_type = #tpu.core_type<tc>, window_params = [{transform_indices = @transform_0, window_bounds = array<i64: 32, 256>}, {pipeline_mode = #tpu.pipeline_mode<synchronous>, transform_indices = @transform_1, window_bounds = array<i64: 256, 128>}, {pipeline_mode = #tpu.pipeline_mode<synchronous>, transform_indices = @transform_2, window_bounds = array<i64: 1, 128>}, {transform_indices = @transform_3, window_bounds = array<i64: 32, 128>}]} {
    %c0 = arith.constant 0 : index
    %c0_0 = arith.constant 0 : index
    %0 = vector.load %arg3[%c0, %c0_0] : memref<1x128xf32, #tpu.memory_space<vmem>>, vector<1x128xf32>
    %c0_1 = arith.constant 0 : index
    %c0_2 = arith.constant 0 : index
    %1 = vector.load %arg1[%c0_1, %c0_2] : memref<32x256xbf16, #tpu.memory_space<vmem>>, vector<32x256xbf16>
    %c0_3 = arith.constant 0 : index
    %c0_4 = arith.constant 0 : index
    %2 = vector.load %arg2[%c0_3, %c0_4] : memref<256x128xbf16, #tpu.memory_space<vmem>>, vector<256x128xbf16>
    %cst = arith.constant dense<0.000000e+00> : vector<32x128xf32>
    %3 = tpu.matmul %1, %2, %cst {dimension_numbers = #tpu.dot_dimension_numbers<[1], [0], [0], [1], [0, 0, 1, 1], [], []>} : vector<32x256xbf16>, vector<256x128xbf16>, vector<32x128xf32> -> vector<32x128xf32>
    %4 = vector.broadcast %0 : vector<1x128xf32> to vector<32x128xf32>
    %5 = arith.addf %4, %3 : vector<32x128xf32>
    %c0_5 = arith.constant 0 : index
    %c0_6 = arith.constant 0 : index
    %6 = vector.load %arg4[%c0_5, %c0_6] : memref<32x128xf32, #tpu.memory_space<vmem>>, vector<32x128xf32>
    tpu.vector_store %arg4[%c0_5, %c0_6], %5 {strides = array<i32>} : memref<32x128xf32, #tpu.memory_space<vmem>>, vector<32x128xf32>,
    return
  }
  func.func @transform_0(%arg0: i32) -> (i32, i32) {
    %c0_i32 = arith.constant 0 : i32
    %c0_i32_0 = arith.constant 0 : i32
    return %arg0, %c0_i32 : i32, i32
  }
  func.func @transform_1(%arg0: i32) -> (i32, i32) {
    %c0_i32 = arith.constant 0 : i32
    %c0_i32_0 = arith.constant 0 : i32
    %c0_i32_1 = arith.constant 0 : i32
    return %c0_i32, %c0_i32_0 : i32, i32
  }
  func.func @transform_2(%arg0: i32) -> (i32, i32) {
    %c0_i32 = arith.constant 0 : i32
    %c0_i32_0 = arith.constant 0 : i32
    %c0_i32_1 = arith.constant 0 : i32
    return %c0_i32, %c0_i32_0 : i32, i32
  }
  func.func @transform_3(%arg0: i32) -> (i32, i32) {
    %c0_i32 = arith.constant 0 : i32
    %c0_i32_0 = arith.constant 0 : i32
    return %arg0, %c0_i32 : i32, i32
  }
}

</mosaic_0001>

<bundles_post_ra>
// kernel: tpu_custom_call.1
= control target key start
LH: loop header
LB: loop body
LE: loop exit
PB: predicated region body
PF: predicated region fallthrough
CT: control target
= control target key end

     0   :  { %8 = vsyncpa [#allocation3], 0  ;;  %s516_s0 = inlined_call_operand.hbm [shape: bf16[32,256], index: 0, kind: input, shape index: {}]   ;;  %s517_s1 = inlined_call_operand.hbm [shape: bf16[256,128], index: 1, kind: input, shape index: {}]   ;;  %s518_s2 = inlined_call_operand.vmem [shape: f32[1,128], index: 2, kind: input, shape index: {}]   ;;  %s519_s3 = inlined_call_operand.hbm [shape: f32[32,128], index: 3, kind: output, shape index: {}]  }
   0x1   :  { %9 = vsyncpa [#allocation6], 0 }
   0x2   :  { %10 = vsyncpa [#allocation4], 0  ;;  %s444_s12 = smov [#allocation2]   ;;  %s372_s16 = scalar_lea.hbm %s516_s0, 512 }
   0x3   :  { %s16_s13 = sshll.u32 %s444_s12, 4  ;;  %p373_p0 = scmp.ne.s32.totalorder %s516_s0, %s372_s16  ;;  %s17_s13 = int_to_ptr.vmem [resolvable:$true] %s16_s13 }
   0x4   :  { %p376_p1 = scmp.lt.u32.totalorder %s372_s16, %s516_s0 }
   0x6   :  { %p378_p2 = pnand %p376_p1, %p373_p0 }
   0x8   :  { %381 = shalt.err (!%p378_p2)
}
   0x9   :  { %s382_s21 = scalar_lea.vmem %s17_s13, 512  ;;  %p387_p4 = scmp.lt.s32.totalorder %s17_s13, %s17_s13 }
   0xa   :  { %p383_p3 = scmp.ne.s32.totalorder %s17_s13, %s382_s21  ;;  %p388_p5 = scmp.lt.s32.totalorder %s382_s21, %s382_s21 }
   0xc   :  { %p389_p6 = por %p388_p5, %p387_p4 }
   0xe   :  { %p390_p7 = pnand %p389_p6, %p383_p3 }
  0x10   :  { %393 = shalt.err (!%p390_p7)
}
  0x11   :  { %s445_s22 = smov 128   ;;  %s446_s23 = smov 8  }
  0x12   :  { %22 = dma.hbm_to_vmem [thread:$0]  %s516_s0, 512, %s17_s13, [#allocation3], %s445_s22, %s445_s22, %s446_s23  }
  0x13   :  { %s447_s26 = smov [#allocation5]   ;;  %s394_s30 = scalar_lea.hbm %s517_s1, 2048 }
  0x14   :  { %s28_s27 = sshll.u32 %s447_s26, 4  ;;  %p395_p8 = scmp.ne.s32.totalorder %s517_s1, %s394_s30  ;;  %s29_s27 = int_to_ptr.vmem [resolvable:$true] %s28_s27 }
  0x15   :  { %p398_p9 = scmp.lt.u32.totalorder %s394_s30, %s517_s1 }
  0x17   :  { %p400_p10 = pnand %p398_p9, %p395_p8 }
  0x19   :  { %403 = shalt.err (!%p400_p10)
}
  0x1a   :  { %s404_s8 = scalar_lea.vmem %s29_s27, 2048  ;;  %p409_p12 = scmp.lt.s32.totalorder %s29_s27, %s29_s27 }
  0x1b   :  { %p405_p11 = scmp.ne.s32.totalorder %s29_s27, %s404_s8  ;;  %p410_p13 = scmp.lt.s32.totalorder %s404_s8, %s404_s8 }
  0x1d   :  { %p411_p0 = por %p410_p13, %p409_p12 }
  0x1f   :  { %p412_p1 = pnand %p411_p0, %p405_p11 }
  0x21   :  { %415 = shalt.err (!%p412_p1)
}
  0x22   :  { %s448_s0 = smov 64   ;;  %s449_s9 = smov 4  }
  0x23   :  { %34 = dma.hbm_to_vmem [thread:$0]  %s517_s1, 2048, %s29_s27, [#allocation6], %s448_s0, %s448_s0, %s449_s9  }
  0x24   :  { %438 = dma.done.wait [#allocation3], 512  }
  0x25   :  { %439 = vsyncadd [#allocation3], 4294966784 }
  0x26   :  { %440 = dma.done.wait [#allocation6], 2048  }
  0x27   :  { %441 = vsyncadd [#allocation6], 4294965248  ;;  %v350_v0 = vld [vmem:[#allocation5 + $0x40] sm:$0xff]   ;;  %v352_v2 = vld [vmem:[#allocation5 + $0x48] sm:$0xff]   ;;  %s450_s13 = smov [#allocation7]  }
  0x28   :  { %v351_v1 = vld [vmem:[#allocation5] sm:$0xff]   ;;  %299 = vmatprep.subr.bf16.mxu0 %v350_v0  ;;  %327 = vmatprep.subr.bf16.mxu1 %v350_v0  ;;  %v353_v3 = vld [vmem:[#allocation5 + $0x8] sm:$0xff]   ;;  %v354_v4 = vld [vmem:[#allocation5 + $0x50] sm:$0xff]   ;;  %s265_s14 = sshll.u32 %s450_s13, 4  ;;  %s266_s14 = int_to_ptr.vmem [resolvable:$true] %s265_s14 }
  0x29   :  { %300 = vmatpush3.bf16.msra.mxu0 %v351_v1  ;;  %335 = vmatpush3.bf16.msra.mxu1 %v351_v1  ;;  %v355_v5 = vld [vmem:[#allocation5 + $0x10] sm:$0xff]   ;;  %v356_v6 = vld [vmem:[#allocation5 + $0x58] sm:$0xff]   ;;  %v358_v8 = vld [vmem:[#allocation5 + $0x60] sm:$0xff]   ;;  %p421_p3 = scmp.lt.s32.totalorder %s266_s14, %s266_s14 }
  0x2a   :  { %301 = vmatprep.subr.bf16.mxu0 %v352_v2  ;;  %328 = vmatprep.subr.bf16.mxu1 %v352_v2  ;;  %v357_v7 = vld [vmem:[#allocation5 + $0x18] sm:$0xff]   ;;  %v359_v9 = vld [vmem:[#allocation5 + $0x20] sm:$0xff]   ;;  %v360_v10 = vld [vmem:[#allocation5 + $0x68] sm:$0xff]  }
  0x2b   :  { %v368_v11 = vld [vmem:[#allocation2 + $0x4] ss:$8 sps:$4 sm:$0xff]   ;;  %v371_v12 = vld [vmem:[#allocation2 + $0x14] ss:$8 sps:$4 sm:$0xff]   ;;  %v366_v18 = vld [vmem:[#allocation2] ss:$8 sps:$4 sm:$0xff]  }
  0x2c   :  { %v361_v13 = vld [vmem:[#allocation5 + $0x28] sm:$0xff]   ;;  %v362_v14 = vld [vmem:[#allocation5 + $0x70] sm:$0xff]   ;;  %229 = vmatprep.mubr.bf16.mxu0 %v368_v11  ;;  %237 = vmatprep.mubr.bf16.mxu1 %v371_v12  ;;  %v364_v16 = vld [vmem:[#allocation5 + $0x78] sm:$0xff]  }
  0x2d   :  { %302 = vmatpush3.bf16.msra.mxu0 %v353_v3  ;;  %336 = vmatpush3.bf16.msra.mxu1 %v353_v3  ;;  %v363_v15 = vld [vmem:[#allocation5 + $0x30] sm:$0xff]   ;;  %v365_v17 = vld [vmem:[#allocation5 + $0x38] sm:$0xff]   ;;  %v298_v22 = vld [vmem:[%s518_s2] ss:$0 sm:$0xff]  ;;  %s416_s2 = scalar_lea.vmem %s266_s14, 512 }
  0x2e   :  { %303 = vmatprep.subr.bf16.mxu0 %v354_v4  ;;  %329 = vmatprep.subr.bf16.mxu1 %v354_v4  ;;  %v369_v19 = vld [vmem:[#allocation2 + $0x10] ss:$8 sps:$4 sm:$0xff]   ;;  %p417_p2 = scmp.ne.s32.totalorder %s266_s14, %s416_s2  ;;  %p422_p4 = scmp.lt.s32.totalorder %s416_s2, %s416_s2 }
  0x30   :  { %p423_p5 = por %p422_p4, %p421_p3 }
  0x31   :  { %304 = vmatpush3.bf16.msra.mxu0 %v355_v5  ;;  %337 = vmatpush3.bf16.msra.mxu1 %v355_v5 }
  0x32   :  { %305 = vmatprep.subr.bf16.mxu0 %v356_v6  ;;  %330 = vmatprep.subr.bf16.mxu1 %v356_v6  ;;  %p424_p6 = pnand %p423_p5, %p417_p2 }
  0x35   :  { %306 = vmatpush3.bf16.msra.mxu0 %v357_v7  ;;  %338 = vmatpush3.bf16.msra.mxu1 %v357_v7 }
  0x36   :  { %307 = vmatprep.subr.bf16.mxu0 %v358_v8  ;;  %331 = vmatprep.subr.bf16.mxu1 %v358_v8 }
  0x39   :  { %308 = vmatpush3.bf16.msra.mxu0 %v359_v9  ;;  %339 = vmatpush3.bf16.msra.mxu1 %v359_v9 }
  0x3a   :  { %309 = vmatprep.subr.bf16.mxu0 %v360_v10  ;;  %332 = vmatprep.subr.bf16.mxu1 %v360_v10 }
  0x3d   :  { %310 = vmatpush3.bf16.msra.mxu0 %v361_v13  ;;  %340 = vmatpush3.bf16.msra.mxu1 %v361_v13 }
  0x3e   :  { %311 = vmatprep.subr.bf16.mxu0 %v362_v14  ;;  %333 = vmatprep.subr.bf16.mxu1 %v362_v14 }
  0x41   :  { %312 = vmatpush3.bf16.msra.mxu0 %v363_v15  ;;  %341 = vmatpush3.bf16.msra.mxu1 %v363_v15 }
  0x42   :  { %313 = vmatprep.subr.bf16.mxu0 %v364_v16  ;;  %334 = vmatprep.subr.bf16.mxu1 %v364_v16 }
  0x45   :  { %314 = vmatpush3.bf16.msra.mxu0 %v365_v17  ;;  %342 = vmatpush3.bf16.msra.mxu1 %v365_v17 }
  0x48   :  { %230 = vmatmul.mubr.bf16.vlgmr.msra.gmra.mrb[0].mxu0 %v366_v18  ;;  %238 = vmatmul.mubr.bf16.vlgmr.msra.gmra.mrb[0].mxu1 %v369_v19 }
 0x11b   :  { %v315_v20 = vpop.f32.mrb[0].mxu0  ;;  %v321_v21 = vpop.f32.mrb[0].mxu1 }
 0x11c   :  { %v316_v23 = vpop.f32.mrb[1].mxu0  ;;  %v322_v24 = vpop.f32.mrb[1].mxu1 }
 0x11d   :  { %v317_v25 = vadd.f32 %v316_v23, %v315_v20  ;;  %v323_v26 = vadd.f32 %v322_v24, %v321_v21  ;;  %v318_v27 = vpop.f32.mrb[2].mxu0  ;;  %v324_v28 = vpop.f32.mrb[2].mxu1 }
 0x11e   :  { %v319_v29 = vpop.f32.mrb[3].mxu0  ;;  %v325_v30 = vpop.f32.mrb[3].mxu1 }
 0x11f   :  { %v252_v31 = vadd.f32 %v317_v25, %v298_v22  ;;  %v254_v32 = vadd.f32 %v323_v26, %v298_v22  ;;  %v320_v33 = vadd.f32 %v319_v29, %v318_v27  ;;  %v326_v34 = vadd.f32 %v325_v30, %v324_v28 }
 0x121   :  { %256 = vst [vmem:[#allocation7] sm:$0xff] %v252_v31  ;;  %258 = vst [vmem:[#allocation7 + $0x10] sm:$0xff] %v254_v32  ;;  %v253_v35 = vadd.f32 %v320_v33, %v298_v22  ;;  %v255_v36 = vadd.f32 %v326_v34, %v298_v22 }
 0x123   :  { %257 = vst [vmem:[#allocation7 + $0x8] sm:$0xff] %v253_v35  ;;  %259 = vst [vmem:[#allocation7 + $0x18] sm:$0xff] %v255_v36 }
 0x124   :  { %427 = shalt.err (!%p424_p6)
}
 0x125   :  { %s428_s17 = scalar_lea.hbm %s519_s3, 512 }
 0x126   :  { %p429_p7 = scmp.ne.s32.totalorder %s519_s3, %s428_s17  ;;  %p432_p8 = scmp.lt.u32.totalorder %s428_s17, %s519_s3 }
 0x128   :  { %p434_p9 = pnand %p432_p8, %p429_p7 }
 0x12a   :  { %437 = shalt.err (!%p434_p9)
}
 0x12b   :  { %271 = dma.vmem_to_hbm [thread:$0]  %s266_s14, 512, %s519_s3, [#allocation4], %s445_s22, %s445_s22, %s446_s23  }
 0x12c   :  { %442 = dma.done.wait [#allocation4], 512  }
 0x12d   :  { %443 = vsyncadd [#allocation4], 4294966784 }
 0x12e   :  { %275 = vsyncpa [#allocation3], 1 }
 0x12f   :  { %276 = vsyncpa [#allocation6], 1 }
 0x130   :  { %277 = vsyncpa [#allocation4], 1 }

</bundles_post_ra>
